<compile_context>
chip_gen: v7x
topology: tpu7x:2x2x1
jax: 0.10.0
libtpu: 0.0.40
codegen_flags: <defaults>
</compile_context>

<pallas_src>
import jax
import jax.numpy as jnp
from jax.experimental import pallas as pl
from jax.experimental.pallas import tpu as pltpu

PACK = 8  # batch rows packed per kernel row (8 * in_dim=16 -> 128 lanes)


def mlp_kernel(x_ref, w1_ref, b1_ref, w2_ref, b2_ref, w3_ref, b3_ref, o_ref):
    # x_ref tile: (tile_rows, PACK*in_dim) -- natural layout, lane-dense.
    x = x_ref[...]
    h1 = jnp.dot(x, w1_ref[...], preferred_element_type=jnp.float32) + b1_ref[...]
    h1 = jnp.maximum(h1, 0.0)
    h2 = jnp.dot(h1, w2_ref[...], preferred_element_type=jnp.float32) + b2_ref[...]
    h2 = jnp.maximum(h2, 0.0)
    o_ref[...] = (
        jnp.dot(h2, w3_ref[...], preferred_element_type=jnp.float32) + b3_ref[...]
    ).astype(o_ref.dtype)


def _round_up(n, m):
    return -(-n // m) * m


def pack_params(params, k=PACK):
    """Bake block-diagonal packed weights once (O(50 KiB) of wrapper work).

    params: PyTorch-layout Linear params: w (out, in), b (out, 1) or (out,).
    Returns a dict of packed float32 arrays consumed by network_forward.
    """
    eye = jnp.eye(k, dtype=jnp.float32)

    def pack_w(w):  # (out,in) -> block-diag of k copies of w.T : (k*in, k*out)
        return jnp.kron(eye, w.T.astype(jnp.float32))

    def pack_b(b):  # (out,1)/(out,) -> (1, k*out)
        return jnp.tile(b.astype(jnp.float32).reshape(-1), k)[None, :]

    return {
        "w1": pack_w(params["w1"]), "b1": pack_b(params["b1"]),
        "w2": pack_w(params["w2"]), "b2": pack_b(params["b2"]),
        "w3": pack_w(params["w3"]), "b3": pack_b(params["b3"]),
    }


def network_forward(x, packed, *, tile_batch=32768):
    """Pallas forward pass for Network.

    x: (batch, input_shape) float32
    packed: output of pack_params(params)
    Returns (batch, output_shape) float32.
    """
    batch, in_dim = x.shape
    assert packed["w1"].shape[0] == PACK * in_dim, "packed params mismatch input"
    out_dim = packed["w3"].shape[1] // PACK

    lane_in = PACK * in_dim      # 128 for in_dim=16
    lane_h1 = PACK * 8           # 64
    lane_h2 = PACK * 16          # 128
    lane_out = PACK * out_dim    # 32 for out_dim=4

    # Free row-major reshape packs PACK batch rows per kernel row. Only pad
    # when batch is not already a multiple of PACK (tiny copy, often skipped).
    pb = _round_up(batch, PACK)
    if pb != batch:
        x = jnp.pad(x, ((0, pb - batch), (0, 0)))
    rows = pb // PACK
    xr = x.reshape(rows, lane_in)

    # Batch tile: big enough to amortize the ~0.35us/step overhead (~2 MiB of
    # x per step at the default), small enough for v5e's 16 MiB scoped VMEM,
    # and capped at ~half the rows so v7x's two TensorCores both get work.
    tr = max(8, tile_batch // PACK)
    tr = min(tr, _round_up(-(-rows // 2), 8))
    if tr >= rows:
        tr = rows                      # single full-array block (any row count)
    grid = (-(-rows // tr),)           # ragged trailing block handled by Pallas

    const = lambda i: (0, 0)           # weights/biases stay VMEM-resident

    cost = pl.CostEstimate(
        flops=2 * rows * PACK * PACK * (in_dim * 8 + 8 * 16 + 16 * out_dim),
        transcendentals=0,
        bytes_accessed=4 * (rows * (lane_in + lane_out)
                            + sum(int(packed[n].size)
                                  for n in ("w1", "b1", "w2", "b2", "w3", "b3"))),
    )

    o = pl.pallas_call(
        mlp_kernel,
        out_shape=jax.ShapeDtypeStruct((rows, lane_out), jnp.float32),
        grid=grid,
        in_specs=[
            pl.BlockSpec((tr, lane_in), lambda i: (i, 0)),   # streamed x tiles
            pl.BlockSpec((lane_in, lane_h1), const),         # W1' (block-diag)
            pl.BlockSpec((1, lane_h1), const),               # b1'
            pl.BlockSpec((lane_h1, lane_h2), const),         # W2'
            pl.BlockSpec((1, lane_h2), const),               # b2'
            pl.BlockSpec((lane_h2, lane_out), const),        # W3'
            pl.BlockSpec((1, lane_out), const),              # b3'
        ],
        out_specs=pl.BlockSpec((tr, lane_out), lambda i: (i, 0)),
        compiler_params=pltpu.CompilerParams(
            dimension_semantics=("parallel",)),
        cost_estimate=cost,
    )(xr, packed["w1"], packed["b1"], packed["w2"], packed["b2"],
      packed["w3"], packed["b3"])

    out = o.reshape(rows * PACK, out_dim)   # free row-major un-pack
    return out if pb == batch else out[:batch]


def init_params(key, input_shape, output_shape):
    """Deterministic init mimicking torch.nn.Linear (uniform +/- 1/sqrt(fan_in)).

    Weights stored in PyTorch layout (out_features, in_features); biases (out, 1).
    """
    def linear(k, fan_in, fan_out):
        kw, kb = jax.random.split(k)
        bound = 1.0 / jnp.sqrt(jnp.float32(fan_in))
        w = jax.random.uniform(kw, (fan_out, fan_in), jnp.float32, -bound, bound)
        b = jax.random.uniform(kb, (fan_out, 1), jnp.float32, -bound, bound)
        return w, b

    k1, k2, k3 = jax.random.split(key, 3)
    w1, b1 = linear(k1, input_shape, 8)
    w2, b2 = linear(k2, 8, 16)
    w3, b3 = linear(k3, 16, output_shape)
    return {"w1": w1, "b1": b1, "w2": w2, "b2": b2, "w3": w3, "b3": b3}


def reference_forward(x, p):
    h1 = jnp.maximum(x @ p["w1"].T + p["b1"].T, 0.0)
    h2 = jnp.maximum(h1 @ p["w2"].T + p["b2"].T, 0.0)
    return h2 @ p["w3"].T + p["b3"].T


if __name__ == "__main__":
    key = jax.random.PRNGKey(0)
    k_params, k_x1, k_x2, k_x3 = jax.random.split(key, 4)

    input_shape = 16   # small flattened state vector
    output_shape = 4   # number of actions
    params = init_params(k_params, input_shape, output_shape)
    packed = pack_params(params)   # block-diagonal weights baked once

    # batch=2: pads to one packed row, single full-array block.
    x_small = jax.random.normal(k_x1, (2, input_shape), jnp.float32)
    out_small = jax.block_until_ready(network_forward(x_small, packed))
    ref_small = reference_forward(x_small, params)
    assert out_small.shape == (2, output_shape)
    assert jnp.allclose(out_small, ref_small, atol=1e-5, rtol=1e-5)

    # batch=300: pad-to-8 path + multi-step grid with a ragged trailing block.
    x_mid = jax.random.normal(k_x2, (300, input_shape), jnp.float32)
    out_mid = jax.block_until_ready(network_forward(x_mid, packed, tile_batch=128))
    ref_mid = reference_forward(x_mid, params)
    assert out_mid.shape == (300, output_shape)
    assert jnp.allclose(out_mid, ref_mid, atol=1e-5, rtol=1e-5)

    # batch=4096: no-pad fast path, >=2 grid steps (both TensorCores on v7x).
    x_big = jax.random.normal(k_x3, (4096, input_shape), jnp.float32)
    out_big = jax.block_until_ready(network_forward(x_big, packed))
    ref_big = reference_forward(x_big, params)
    assert out_big.shape == (4096, output_shape)
    assert jnp.allclose(out_big, ref_big, atol=1e-5, rtol=1e-5)

    print("KERNEL_OK")
</pallas_src>

<mosaic_0001>
module attributes {stable_mosaic.version = 11 : i64} {
  func.func @mlp_kernel(%arg0: i32, %arg1: memref<1x128xf32, #tpu.memory_space<vmem>>, %arg2: memref<128x64xf32, #tpu.memory_space<vmem>>, %arg3: memref<1x64xf32, #tpu.memory_space<vmem>>, %arg4: memref<64x128xf32, #tpu.memory_space<vmem>>, %arg5: memref<1x128xf32, #tpu.memory_space<vmem>>, %arg6: memref<128x32xf32, #tpu.memory_space<vmem>>, %arg7: memref<1x32xf32, #tpu.memory_space<vmem>>, %arg8: memref<1x32xf32, #tpu.memory_space<vmem>>) attributes {dimension_semantics = [#tpu.dimension_semantics<parallel>], iteration_bounds = array<i64: 1>, scalar_prefetch = 0 : i64, scratch_operands = 0 : i64, tpu.core_type = #tpu.core_type<tc>, window_params = [{transform_indices = @transform_0, window_bounds = array<i64: 1, 128>}, {pipeline_mode = #tpu.pipeline_mode<synchronous>, transform_indices = @transform_1, window_bounds = array<i64: 128, 64>}, {pipeline_mode = #tpu.pipeline_mode<synchronous>, transform_indices = @transform_2, window_bounds = array<i64: 1, 64>}, {pipeline_mode = #tpu.pipeline_mode<synchronous>, transform_indices = @transform_3, window_bounds = array<i64: 64, 128>}, {pipeline_mode = #tpu.pipeline_mode<synchronous>, transform_indices = @transform_4, window_bounds = array<i64: 1, 128>}, {pipeline_mode = #tpu.pipeline_mode<synchronous>, transform_indices = @transform_5, window_bounds = array<i64: 128, 32>}, {pipeline_mode = #tpu.pipeline_mode<synchronous>, transform_indices = @transform_6, window_bounds = array<i64: 1, 32>}, {transform_indices = @transform_7, window_bounds = array<i64: 1, 32>}]} {
    %c0 = arith.constant 0 : index
    %c0_0 = arith.constant 0 : index
    %0 = vector.load %arg1[%c0, %c0_0] : memref<1x128xf32, #tpu.memory_space<vmem>>, vector<1x128xf32>
    %c0_1 = arith.constant 0 : index
    %c0_2 = arith.constant 0 : index
    %1 = vector.load %arg2[%c0_1, %c0_2] : memref<128x64xf32, #tpu.memory_space<vmem>>, vector<128x64xf32>
    %cst = arith.constant dense<0.000000e+00> : vector<1x64xf32>
    %2 = tpu.matmul %0, %1, %cst {dimension_numbers = #tpu.dot_dimension_numbers<[1], [0], [0], [1], [0, 0, 1, 1], [], []>} : vector<1x128xf32>, vector<128x64xf32>, vector<1x64xf32> -> vector<1x64xf32>
    %c0_3 = arith.constant 0 : index
    %c0_4 = arith.constant 0 : index
    %3 = vector.load %arg3[%c0_3, %c0_4] : memref<1x64xf32, #tpu.memory_space<vmem>>, vector<1x64xf32>
    %4 = arith.addf %2, %3 : vector<1x64xf32>
    %cst_5 = arith.constant 0.000000e+00 : f32
    %5 = vector.broadcast %cst_5 : f32 to vector<1x64xf32>
    %6 = arith.maximumf %4, %5 : vector<1x64xf32>
    %c0_6 = arith.constant 0 : index
    %c0_7 = arith.constant 0 : index
    %7 = vector.load %arg4[%c0_6, %c0_7] : memref<64x128xf32, #tpu.memory_space<vmem>>, vector<64x128xf32>
    %cst_8 = arith.constant dense<0.000000e+00> : vector<1x128xf32>
    %8 = tpu.matmul %6, %7, %cst_8 {dimension_numbers = #tpu.dot_dimension_numbers<[1], [0], [0], [1], [0, 0, 1, 1], [], []>} : vector<1x64xf32>, vector<64x128xf32>, vector<1x128xf32> -> vector<1x128xf32>
    %c0_9 = arith.constant 0 : index
    %c0_10 = arith.constant 0 : index
    %9 = vector.load %arg5[%c0_9, %c0_10] : memref<1x128xf32, #tpu.memory_space<vmem>>, vector<1x128xf32>
    %10 = arith.addf %8, %9 : vector<1x128xf32>
    %cst_11 = arith.constant 0.000000e+00 : f32
    %11 = vector.broadcast %cst_11 : f32 to vector<1x128xf32>
    %12 = arith.maximumf %10, %11 : vector<1x128xf32>
    %c0_12 = arith.constant 0 : index
    %c0_13 = arith.constant 0 : index
    %13 = vector.load %arg6[%c0_12, %c0_13] : memref<128x32xf32, #tpu.memory_space<vmem>>, vector<128x32xf32>
    %cst_14 = arith.constant dense<0.000000e+00> : vector<1x32xf32>
    %14 = tpu.matmul %12, %13, %cst_14 {dimension_numbers = #tpu.dot_dimension_numbers<[1], [0], [0], [1], [0, 0, 1, 1], [], []>} : vector<1x128xf32>, vector<128x32xf32>, vector<1x32xf32> -> vector<1x32xf32>
    %c0_15 = arith.constant 0 : index
    %c0_16 = arith.constant 0 : index
    %15 = vector.load %arg7[%c0_15, %c0_16] : memref<1x32xf32, #tpu.memory_space<vmem>>, vector<1x32xf32>
    %16 = arith.addf %14, %15 : vector<1x32xf32>
    %c0_17 = arith.constant 0 : index
    %c0_18 = arith.constant 0 : index
    %17 = vector.load %arg8[%c0_17, %c0_18] : memref<1x32xf32, #tpu.memory_space<vmem>>, vector<1x32xf32>
    tpu.vector_store %arg8[%c0_17, %c0_18], %16 {strides = array<i32>} : memref<1x32xf32, #tpu.memory_space<vmem>>, vector<1x32xf32>,
    return
  }
  func.func @transform_0(%arg0: i32) -> (i32, i32) {
    %c0_i32 = arith.constant 0 : i32
    %c0_i32_0 = arith.constant 0 : i32
    return %arg0, %c0_i32 : i32, i32
  }
  func.func @transform_1(%arg0: i32) -> (i32, i32) {
    %c0_i32 = arith.constant 0 : i32
    %c0_i32_0 = arith.constant 0 : i32
    %c0_i32_1 = arith.constant 0 : i32
    return %c0_i32, %c0_i32_0 : i32, i32
  }
  func.func @transform_2(%arg0: i32) -> (i32, i32) {
    %c0_i32 = arith.constant 0 : i32
    %c0_i32_0 = arith.constant 0 : i32
    %c0_i32_1 = arith.constant 0 : i32
    return %c0_i32, %c0_i32_0 : i32, i32
  }
  func.func @transform_3(%arg0: i32) -> (i32, i32) {
    %c0_i32 = arith.constant 0 : i32
    %c0_i32_0 = arith.constant 0 : i32
    %c0_i32_1 = arith.constant 0 : i32
    return %c0_i32, %c0_i32_0 : i32, i32
  }
  func.func @transform_4(%arg0: i32) -> (i32, i32) {
    %c0_i32 = arith.constant 0 : i32
    %c0_i32_0 = arith.constant 0 : i32
    %c0_i32_1 = arith.constant 0 : i32
    return %c0_i32, %c0_i32_0 : i32, i32
  }
  func.func @transform_5(%arg0: i32) -> (i32, i32) {
    %c0_i32 = arith.constant 0 : i32
    %c0_i32_0 = arith.constant 0 : i32
    %c0_i32_1 = arith.constant 0 : i32
    return %c0_i32, %c0_i32_0 : i32, i32
  }
  func.func @transform_6(%arg0: i32) -> (i32, i32) {
    %c0_i32 = arith.constant 0 : i32
    %c0_i32_0 = arith.constant 0 : i32
    %c0_i32_1 = arith.constant 0 : i32
    return %c0_i32, %c0_i32_0 : i32, i32
  }
  func.func @transform_7(%arg0: i32) -> (i32, i32) {
    %c0_i32 = arith.constant 0 : i32
    %c0_i32_0 = arith.constant 0 : i32
    return %arg0, %c0_i32 : i32, i32
  }
}

</mosaic_0001>

<bundles_post_ra>
// kernel: tpu_custom_call.1
= control target key start
LH: loop header
LB: loop body
LE: loop exit
PB: predicated region body
PF: predicated region fallthrough
CT: control target
= control target key end

     0   :  { %v524_v3 = vmov 0.0|0.0   ;;  %vm525_vm0 = vmmov 0   ;;  %v526_v6 = vmov 0.0   ;;  %s738_s0 = inlined_call_operand.vmem [shape: f32[1,128], index: 0, kind: input, shape index: {}]   ;;  %s739_s1 = inlined_call_operand.vmem [shape: f32[128,64], index: 1, kind: input, shape index: {}]   ;;  %s740_s2 = inlined_call_operand.vmem [shape: f32[1,64], index: 2, kind: input, shape index: {}]   ;;  %s741_s3 = inlined_call_operand.vmem [shape: f32[64,128], index: 3, kind: input, shape index: {}]   ;;  %s742_s4 = inlined_call_operand.vmem [shape: f32[1,128], index: 4, kind: input, shape index: {}]   ;;  %s743_s5 = inlined_call_operand.vmem [shape: f32[128,32], index: 5, kind: input, shape index: {}]   ;;  %s744_s6 = inlined_call_operand.vmem [shape: f32[1,32], index: 6, kind: input, shape index: {}]   ;;  %s745_s7 = inlined_call_operand.hbm [shape: f32[1,32], index: 7, kind: output, shape index: {}]  }
   0x1   :  { %v28_v0 = vld [vmem:[%s739_s1] sm:$0xff]  ;;  %v29_v1 = vld [vmem:[%s739_s1 + $0x8] sm:$0xff]  ;;  %v30_v2 = vld [vmem:[%s739_s1 + $0x10] sm:$0xff]  ;;  %436 = vmatprep.subr.bf16.mxu0 %v524_v3  ;;  %379 = vmatprep.mubr.msk.f32.mxu0 %vm525_vm0, %v526_v6 }
   0x2   :  { %v437_v4 = vpack.c.bf16 %v29_v1, %v28_v0  ;;  %v31_v5 = vld [vmem:[%s739_s1 + $0x18] sm:$0xff]  ;;  %460 = vmatprep.subr.bf16.mxu1 %v524_v3  ;;  %398 = vmatprep.mubr.msk.f32.mxu1 %vm525_vm0, %v526_v6  ;;  %v32_v8 = vld [vmem:[%s739_s1 + $0x20] sm:$0xff]  ;;  %v33_v9 = vld [vmem:[%s739_s1 + $0x28] sm:$0xff] }
   0x3   :  { %v440_v7 = vpack.c.bf16 %v31_v5, %v30_v2  ;;  %v116_v10 = vld [vmem:[%s741_s3] sm:$0xff]  ;;  %v117_v11 = vld [vmem:[%s741_s3 + $0x8] sm:$0xff]  ;;  %v118_v12 = vld [vmem:[%s741_s3 + $0x10] sm:$0xff]  ;;  %v443_v14 = vpack.c.bf16 %v33_v9, %v32_v8 }
   0x4   :  { %438 = vmatpush3.bf16.msra.mxu0 %v437_v4  ;;  %v119_v13 = vld [vmem:[%s741_s3 + $0x18] sm:$0xff]  ;;  %v461_v15 = vpack.c.bf16 %v117_v11, %v116_v10  ;;  %v34_v16 = vld [vmem:[%s739_s1 + $0x30] sm:$0xff] }
   0x5   :  { %439 = vmatprep.subr.bf16.mxu0 %v524_v3  ;;  %v35_v17 = vld [vmem:[%s739_s1 + $0x38] sm:$0xff] }
   0x8   :  { %441 = vmatpush3.bf16.msra.mxu0 %v440_v7 }
   0x9   :  { %442 = vmatprep.subr.bf16.mxu0 %v524_v3 }
   0xa   :  { %12 = vsyncpa [#allocation3], 0  ;;  %462 = vmatpush3.bf16.msra.mxu1 %v461_v15  ;;  %v464_v18 = vpack.c.bf16 %v119_v13, %v118_v12  ;;  %v120_v19 = vld [vmem:[%s741_s3 + $0x20] sm:$0xff]  ;;  %v121_v20 = vld [vmem:[%s741_s3 + $0x28] sm:$0xff]  ;;  %v446_v21 = vpack.c.bf16 %v35_v17, %v34_v16  ;;  %vm125_vm1 = vcmask 523264   ;;  %s527_s12 = smov [#allocation2]  }
   0xb   :  { %463 = vmatprep.subr.bf16.mxu1 %v524_v3  ;;  %v36_v22 = vld [vmem:[%s739_s1 + $0x40] sm:$0xff]  ;;  %v37_v23 = vld [vmem:[%s739_s1 + $0x48] sm:$0xff]  ;;  %v467_v24 = vpack.c.bf16 %v121_v20, %v120_v19  ;;  %v38_v26 = vld [vmem:[%s739_s1 + $0x50] sm:$0xff]  ;;  %s295_s13 = sshll.u32 %s527_s12, 4  ;;  %vm287_vm2 = vcmask 253952   ;;  %s296_s13 = int_to_ptr.vmem [resolvable:$true] %s295_s13 }
   0xc   :  { %444 = vmatpush3.bf16.msra.mxu0 %v443_v14  ;;  %v449_v25 = vpack.c.bf16 %v37_v23, %v36_v22  ;;  %v39_v27 = vld [vmem:[%s739_s1 + $0x58] sm:$0xff]  ;;  %v40_v29 = vld [vmem:[%s739_s1 + $0x60] sm:$0xff]  ;;  %v41_v30 = vld [vmem:[%s739_s1 + $0x68] sm:$0xff]  ;;  %p505_p1 = scmp.lt.s32.totalorder %s296_s13, %s296_s13 }
   0xd   :  { %445 = vmatprep.subr.bf16.mxu0 %v524_v3  ;;  %v452_v28 = vpack.c.bf16 %v39_v27, %v38_v26  ;;  %v455_v31 = vpack.c.bf16 %v41_v30, %v40_v29  ;;  %v42_v32 = vld [vmem:[%s739_s1 + $0x70] sm:$0xff]  ;;  %v43_v33 = vld [vmem:[%s739_s1 + $0x78] sm:$0xff]  ;;  %v27_v35 = vld [vmem:[%s738_s0] sm:$0x1] }
   0xe   :  { %465 = vmatpush3.bf16.msra.mxu1 %v464_v18  ;;  %v458_v34 = vpack.c.bf16 %v43_v33, %v42_v32  ;;  %v122_v36 = vld [vmem:[%s741_s3 + $0x30] sm:$0xff]  ;;  %v123_v37 = vld [vmem:[%s741_s3 + $0x38] sm:$0xff]  ;;  %v44_v39 = vld [vmem:[%s740_s2] sm:$0x1] }
   0xf   :  { %466 = vmatprep.subr.bf16.mxu1 %v524_v3  ;;  %v470_v38 = vpack.c.bf16 %v123_v37, %v122_v36  ;;  %v200_v40 = vld [vmem:[%s743_s5] sm:$0xff]  ;;  %v201_v41 = vld [vmem:[%s743_s5 + $0x8] sm:$0xff]  ;;  %v202_v47 = vld [vmem:[%s743_s5 + $0x10] sm:$0xff] }
  0x10   :  { %447 = vmatpush3.bf16.msra.mxu0 %v446_v21  ;;  %v473_v45 = vpack.c.bf16 %v201_v41, %v200_v40  ;;  %v203_v48 = vld [vmem:[%s743_s5 + $0x18] sm:$0xff]  ;;  %v204_v50 = vld [vmem:[%s743_s5 + $0x20] sm:$0xff]  ;;  %v205_v51 = vld [vmem:[%s743_s5 + $0x28] sm:$0xff] }
  0x11   :  { %448 = vmatprep.subr.bf16.mxu0 %v524_v3  ;;  %v476_v49 = vpack.c.bf16 %v203_v48, %v202_v47  ;;  %v479_v52 = vpack.c.bf16 %v205_v51, %v204_v50  ;;  %v206_v53 = vld [vmem:[%s743_s5 + $0x30] sm:$0xff]  ;;  %v207_v54 = vld [vmem:[%s743_s5 + $0x38] sm:$0xff]  ;;  %v208_v56 = vld [vmem:[%s743_s5 + $0x40] sm:$0xff] }
  0x12   :  { %468 = vmatpush3.bf16.msra.mxu1 %v467_v24  ;;  %v482_v55 = vpack.c.bf16 %v207_v54, %v206_v53  ;;  %v209_v57 = vld [vmem:[%s743_s5 + $0x48] sm:$0xff]  ;;  %v210_v59 = vld [vmem:[%s743_s5 + $0x50] sm:$0xff]  ;;  %v211_v60 = vld [vmem:[%s743_s5 + $0x58] sm:$0xff] }
  0x13   :  { %469 = vmatprep.subr.bf16.mxu1 %v524_v3  ;;  %v485_v58 = vpack.c.bf16 %v209_v57, %v208_v56  ;;  %v488_v61 = vpack.c.bf16 %v211_v60, %v210_v59  ;;  %v212_v62 = vld [vmem:[%s743_s5 + $0x60] sm:$0xff]  ;;  %v213_v63 = vld [vmem:[%s743_s5 + $0x68] sm:$0xff]  ;;  %v214_v1 = vld [vmem:[%s743_s5 + $0x70] sm:$0xff] }
  0x14   :  { %450 = vmatpush3.bf16.msra.mxu0 %v449_v25  ;;  %v491_v0 = vpack.c.bf16 %v213_v63, %v212_v62  ;;  %v215_v2 = vld [vmem:[%s743_s5 + $0x78] sm:$0xff]  ;;  %v124_v5 = vld [vmem:[%s742_s4] sm:$0x1]  ;;  %s500_s5 = scalar_lea.vmem %s296_s13, 16  ;;  %s504_s4 = scalar_lea.vmem %s296_s13, 32 }
  0x15   :  { %451 = vmatprep.subr.bf16.mxu0 %v524_v3  ;;  %v494_v4 = vpack.c.bf16 %v215_v2, %v214_v1  ;;  %p501_p0 = scmp.ne.s32.totalorder %s296_s13, %s500_s5  ;;  %p506_p2 = scmp.lt.s32.totalorder %s504_s4, %s500_s5 }
  0x16   :  { %471 = vmatpush3.bf16.msra.mxu1 %v470_v38 }
  0x17   :  { %472 = vmatprep.subr.bf16.mxu1 %v524_v3  ;;  %p507_p3 = por %p506_p2, %p505_p1 }
  0x18   :  { %453 = vmatpush3.bf16.msra.mxu0 %v452_v28 }
  0x19   :  { %454 = vmatprep.subr.bf16.mxu0 %v524_v3  ;;  %p508_p4 = pnand %p507_p3, %p501_p0 }
  0x1c   :  { %456 = vmatpush3.bf16.msra.mxu0 %v455_v31 }
  0x1d   :  { %457 = vmatprep.subr.bf16.mxu0 %v524_v3 }
  0x20   :  { %459 = vmatpush3.bf16.msra.mxu0 %v458_v34 }
  0x23   :  { %380 = vmatmul.mubr.f32.vlgmr.msra.gmra.mrb[0].mxu0 %v27_v35 }
  0xf6   :  { %v111_v42 = vpop.f32.mrb[0].mxu0 }
  0xf7   :  { %v112_v43 = vadd.f32 %v111_v42, %v44_v39  ;;  %v381_v44 = vpop.f32.mrb[1].mxu0 }
  0xf9   :  { %v115_v46 = vmax.f32 %v112_v43, 0.0 }
  0xfb   :  { %399 = vmatmul.mubr.msk.f32.vlgmr.msra.gmra.mrb[0].mxu1 %vm125_vm1, %v115_v46 }
  0xfc   :  { %474 = vmatpush3.bf16.msra.mxu1 %v473_v45  ;;  %433 = vmatprep.mubr.msk.f32.mxu1 %vm525_vm0, %v526_v6 }
  0xfd   :  { %475 = vmatprep.subr.bf16.mxu1 %v524_v3 }
 0x100   :  { %477 = vmatpush3.bf16.msra.mxu1 %v476_v49 }
 0x101   :  { %478 = vmatprep.subr.bf16.mxu1 %v524_v3 }
 0x104   :  { %480 = vmatpush3.bf16.msra.mxu1 %v479_v52 }
 0x105   :  { %481 = vmatprep.subr.bf16.mxu1 %v524_v3 }
 0x108   :  { %483 = vmatpush3.bf16.msra.mxu1 %v482_v55 }
 0x109   :  { %484 = vmatprep.subr.bf16.mxu1 %v524_v3 }
 0x10c   :  { %486 = vmatpush3.bf16.msra.mxu1 %v485_v58 }
 0x10d   :  { %487 = vmatprep.subr.bf16.mxu1 %v524_v3 }
 0x110   :  { %489 = vmatpush3.bf16.msra.mxu1 %v488_v61 }
 0x111   :  { %490 = vmatprep.subr.bf16.mxu1 %v524_v3 }
 0x114   :  { %492 = vmatpush3.bf16.msra.mxu1 %v491_v0 }
 0x115   :  { %493 = vmatprep.subr.bf16.mxu1 %v524_v3  ;;  %v216_v3 = vld [vmem:[%s744_s6] sm:$0x1] }
 0x118   :  { %495 = vmatpush3.bf16.msra.mxu1 %v494_v4 }
 0x1ce   :  { %v195_v6 = vpop.f32.mrb[0].mxu1 }
 0x1cf   :  { %v196_v7 = vadd.f32 %v195_v6, %v124_v5  ;;  %v400_v8 = vpop.f32.mrb[1].mxu1 }
 0x1d1   :  { %v199_v9 = vmax.f32 %v196_v7, 0.0 }
 0x1d3   :  { %434 = vmatmul.mubr.f32.vlgmr.msra.gmra.mrb[2].mxu1 %v199_v9 }
 0x2a6   :  { %v283_v10 = vpop.f32.mrb[2].mxu1 }
 0x2a7   :  { %v284_v11 = vadd.f32 %v283_v10, %v216_v3  ;;  %v435_v12 = vpop.f32.mrb[3].mxu1 }
 0x2a9   :  { %288 = vst.msk [vmem:[#allocation2] sm:$0x1] %vm287_vm2, %v284_v11 }
 0x2aa   :  { %511 = shalt.err (!%p508_p4)
}
 0x2ab   :  { %s512_s6 = scalar_lea.hbm %s745_s7, 16 }
 0x2ac   :  { %p513_p5 = scmp.ne.s32.totalorder %s745_s7, %s512_s6  ;;  %p516_p6 = scmp.lt.u32.totalorder %s512_s6, %s745_s7 }
 0x2ae   :  { %p518_p7 = pnand %p516_p6, %p513_p5 }
 0x2b0   :  { %521 = shalt.err (!%p518_p7)
}
 0x2b1   :  { %298 = dma.vmem_to_hbm [thread:$0]  %s296_s13, 16, %s745_s7, [#allocation3]  }
 0x2b2   :  { %522 = dma.done.wait [#allocation3], 16  }
 0x2b3   :  { %523 = vsyncadd [#allocation3], 4294967280 }
 0x2b4   :  { %302 = vsyncpa [#allocation3], 1 }

</bundles_post_ra>
